<compile_context>
chip_gen: v5e
topology: v5e:2x2
jax: 0.10.0
libtpu: 0.0.40
codegen_flags: <defaults>
</compile_context>

<pallas_src>
import collections

import jax
import jax.numpy as jnp
import numpy as np
from jax.experimental import pallas as pl
from jax.experimental.pallas import tpu as pltpu


# ----------------------------------------------------------------------------
# Helpers
# ----------------------------------------------------------------------------
def _round_up(v, m):
    return ((v + m - 1) // m) * m


def _split_dim(dim, tile_default, align):
    """Pick (tile, padded_dim, n_blocks) that minimizes padding for `dim`."""
    n_blocks = max(1, -(-dim // tile_default))            # ceil(dim / default)
    tile = _round_up(-(-dim // n_blocks), align)           # ceil(dim / n) -> align
    return tile, tile * n_blocks, n_blocks


def _vmem_capacity_bytes():
    try:
        return int(pltpu.get_tpu_info().vmem_capacity_bytes)
    except Exception:
        return 64 * 1024 * 1024   # conservative (v7x per-core VMEM)


_Plan = collections.namedtuple(
    "_Plan",
    ["N", "K", "Np", "Kp", "tn", "tk", "n_blocks", "k_blocks",
     "use_reduction", "compute_dtype", "tm_default", "vmem_limit"])


def _make_plan(K, N, *, compute_dtype=jnp.bfloat16, tm_default=512,
               tn_default=512, tk_default=1024, single_pass=None):
    """Static (per-layer) tiling plan; depends only on K, N and dtypes."""
    capacity = _vmem_capacity_bytes()
    # Generation-aware scoped-VMEM limit with headroom (v7x: 64 MiB physical).
    vmem_limit = max(min(capacity - 16 * 1024 * 1024, 100 * 1024 * 1024),
                     32 * 1024 * 1024)
    budget = (vmem_limit * 3) // 4            # double-buffered tile footprint cap
    in_item = jnp.dtype(compute_dtype).itemsize

    tn, Np, n_blocks = _split_dim(N, tn_default, 128)

    # --- Path A: single K pass, weight-stationary across the batch axis. ----
    Kp_full = _round_up(K, 128)
    foot_a = (2 * (tm_default * Kp_full + Kp_full * tn) * in_item
              + 2 * tm_default * tn * 4)
    use_single = (foot_a <= budget) if single_pass is None else bool(single_pass)
    if use_single:
        return _Plan(N, K, Np, Kp_full, tn, Kp_full, n_blocks, 1,
                     False, compute_dtype, tm_default, vmem_limit)

    # --- Path B: K-reduction grid axis + f32 VMEM accumulator. --------------
    tk_try = max(tk_default, 128)
    while True:
        tk, Kp, k_blocks = _split_dim(K, tk_try, 128)
        foot_b = (2 * (tm_default * tk + tk * tn) * in_item
                  + 2 * tm_default * tn * 4 + tm_default * tn * 4)
        if foot_b <= budget or tk_try <= 128:
            break
        tk_try //= 2
    return _Plan(N, K, Np, Kp, tn, tk, n_blocks, k_blocks,
                 True, compute_dtype, tm_default, vmem_limit)


def prepare_weights(weights, plan):
    """One-time prep: cast -> transpose to (K, N) -> zero-pad to (Kp, Np)."""
    N, K = weights.shape
    assert (N, K) == (plan.N, plan.K)
    wt = jnp.asarray(weights).astype(plan.compute_dtype).T     # (K, N)
    if (plan.Kp, plan.Np) != (K, N):
        wt = jnp.pad(wt, ((0, plan.Kp - K), (0, plan.Np - N)))
    return wt


# ----------------------------------------------------------------------------
# Kernels
# ----------------------------------------------------------------------------
def _matmul_kernel_single_pass(x_ref, w_ref, o_ref):
    """One (tm, tn) output tile in a single MXU pass over the full K.

    x_ref: (tm, Kp)   activations
    w_ref: (Kp, tn)   weights (pre-transposed, canonical MXU feed)
    """
    o_ref[...] = jnp.dot(
        x_ref[...], w_ref[...], preferred_element_type=jnp.float32
    ).astype(o_ref.dtype)


def _matmul_kernel_k_reduce(x_ref, w_ref, o_ref, acc_ref):
    """One (tm, tn) output tile, reduced over the K grid axis (axis 2)."""
    @pl.when(pl.program_id(2) == 0)
    def _():
        acc_ref[...] = jnp.zeros_like(acc_ref)

    acc_ref[...] += jnp.dot(
        x_ref[...], w_ref[...], preferred_element_type=jnp.float32)

    @pl.when(pl.program_id(2) == pl.num_programs(2) - 1)
    def _():
        o_ref[...] = acc_ref[...].astype(o_ref.dtype)


# ----------------------------------------------------------------------------
# Forward
# ----------------------------------------------------------------------------
def _forward_prepared(x, w_prepped, plan):
    """y = x @ W.T with W already prepared as a (Kp, Np) padded transpose."""
    B, K = x.shape
    assert K == plan.K, "x inner dim must equal input_size"
    out_dtype = x.dtype
    in_item = jnp.dtype(plan.compute_dtype).itemsize
    out_item = jnp.dtype(out_dtype).itemsize

    # Adaptive batch tile (minimal padding, 8-aligned sublane dim).
    tm, Bp, b_blocks = _split_dim(B, plan.tm_default, 8)

    xp = x.astype(plan.compute_dtype)
    if (Bp, plan.Kp) != (B, K):
        xp = jnp.pad(xp, ((0, Bp - B), (0, plan.Kp - K)))

    if not plan.use_reduction:
        # Weight-stationary: N blocks on the outer axis, batch blocks inner.
        # The weight block index is constant across the inner axis, so the
        # (Kp, tn) weight tile stays VMEM-resident while x tiles stream.
        grid = (plan.n_blocks, b_blocks)
        cost = pl.CostEstimate(
            flops=2 * Bp * plan.Np * plan.Kp,
            transcendentals=0,
            bytes_accessed=(Bp * plan.Kp * in_item * plan.n_blocks
                            + plan.Kp * plan.Np * in_item
                            + Bp * plan.Np * out_item))
        out = pl.pallas_call(
            _matmul_kernel_single_pass,
            out_shape=jax.ShapeDtypeStruct((Bp, plan.Np), out_dtype),
            grid=grid,
            in_specs=[
                pl.BlockSpec((tm, plan.Kp), lambda j, i: (i, 0)),
                pl.BlockSpec((plan.Kp, plan.tn), lambda j, i: (0, j)),
            ],
            out_specs=pl.BlockSpec((tm, plan.tn), lambda j, i: (i, j)),
            compiler_params=pltpu.CompilerParams(
                dimension_semantics=("parallel", "parallel"),
                vmem_limit_bytes=plan.vmem_limit),
            cost_estimate=cost,
        )(xp, w_prepped)
    else:
        grid = (b_blocks, plan.n_blocks, plan.k_blocks)
        cost = pl.CostEstimate(
            flops=2 * Bp * plan.Np * plan.Kp,
            transcendentals=0,
            bytes_accessed=(Bp * plan.Kp * in_item * plan.n_blocks
                            + plan.Kp * plan.Np * in_item * b_blocks
                            + Bp * plan.Np * out_item))
        out = pl.pallas_call(
            _matmul_kernel_k_reduce,
            out_shape=jax.ShapeDtypeStruct((Bp, plan.Np), out_dtype),
            grid=grid,
            in_specs=[
                pl.BlockSpec((tm, plan.tk), lambda i, j, k: (i, k)),
                pl.BlockSpec((plan.tk, plan.tn), lambda i, j, k: (k, j)),
            ],
            out_specs=pl.BlockSpec((tm, plan.tn), lambda i, j, k: (i, j)),
            scratch_shapes=[pltpu.VMEM((tm, plan.tn), jnp.float32)],
            compiler_params=pltpu.CompilerParams(
                dimension_semantics=("parallel", "parallel", "arbitrary"),
                vmem_limit_bytes=plan.vmem_limit),
            cost_estimate=cost,
        )(xp, w_prepped)

    if (Bp, plan.Np) != (B, plan.N):
        out = out[:B, :plan.N]
    return out


def classical_layer_forward(x, weights, *, compute_dtype=jnp.bfloat16,
                            tm_default=512, tn_default=512, tk_default=1024,
                            single_pass=None):
    """Standalone forward: y = x @ weights.T (weights prepared per call)."""
    N, K = weights.shape
    plan = _make_plan(K, N, compute_dtype=compute_dtype,
                      tm_default=tm_default, tn_default=tn_default,
                      tk_default=tk_default, single_pass=single_pass)
    w_prepped = prepare_weights(weights, plan)
    return _forward_prepared(x, w_prepped, plan)


class ClassicalLayerPallas:
    """Mirror of the PyTorch ClassicalLayer (forward only).

    Weight preparation (bf16 cast, transpose to (K, N), padding) is done once
    at construction; every __call__ launches the kernel directly.
    """

    def __init__(self, input_size, output_size, init_weights=None, *,
                 compute_dtype=jnp.bfloat16, tm_default=512, tn_default=512,
                 tk_default=1024, single_pass=None):
        self.input_size = input_size
        self.output_size = output_size
        if (init_weights is not None
                and tuple(init_weights.shape) == (output_size, input_size)):
            weights = jnp.asarray(init_weights, dtype=jnp.float32)
        else:
            # PyTorch default in the reference module: zeros.
            weights = jnp.zeros((output_size, input_size), jnp.float32)
        self.weights = weights
        self._plan = _make_plan(input_size, output_size,
                                compute_dtype=compute_dtype,
                                tm_default=tm_default, tn_default=tn_default,
                                tk_default=tk_default, single_pass=single_pass)
        self._w_prepped = prepare_weights(weights, self._plan)

    def __call__(self, x):
        return _forward_prepared(x, self._w_prepped, self._plan)


# ----------------------------------------------------------------------------
# Self-test
# ----------------------------------------------------------------------------
def _rel_err(got, want):
    got = np.asarray(got, np.float64)
    want = np.asarray(want, np.float64)
    denom = max(np.max(np.abs(want)), 1e-6)
    return float(np.max(np.abs(got - want)) / denom)


if __name__ == "__main__":
    key = jax.random.PRNGKey(0)
    kx, kw = jax.random.split(key)

    # 1) Small shapes consistent with the module (single-block fast path).
    batch, input_size, output_size = 8, 32, 16
    x = jax.random.normal(kx, (batch, input_size), dtype=jnp.float32)
    init_w = jax.random.normal(kw, (output_size, input_size), dtype=jnp.float32)

    layer = ClassicalLayerPallas(input_size, output_size, init_weights=init_w)
    out = jax.block_until_ready(layer(x))

    ref = np.asarray(x, np.float64) @ np.asarray(init_w, np.float64).T
    assert out.shape == (batch, output_size)
    assert out.dtype == x.dtype
    assert _rel_err(out, ref) < 2e-2, "mismatch vs reference (small case)"

    # 2) Non-aligned shapes on the weight-stationary single-pass path.
    B2, K2, N2 = 300, 640, 384
    kx2, kw2 = jax.random.split(jax.random.PRNGKey(1))
    x2 = jax.random.normal(kx2, (B2, K2), dtype=jnp.float32)
    w2 = jax.random.normal(kw2, (N2, K2), dtype=jnp.float32)
    out2 = jax.block_until_ready(classical_layer_forward(x2, w2))
    ref2 = np.asarray(x2, np.float64) @ np.asarray(w2, np.float64).T
    assert out2.shape == (B2, N2)
    assert _rel_err(out2, ref2) < 2e-2, "mismatch vs reference (single-pass)"

    # 3) Force the K-reduction (accumulator) path to exercise it as well.
    B3, K3, N3 = 300, 1024, 384
    kx3, kw3 = jax.random.split(jax.random.PRNGKey(2))
    x3 = jax.random.normal(kx3, (B3, K3), dtype=jnp.float32)
    w3 = jax.random.normal(kw3, (N3, K3), dtype=jnp.float32)
    out3 = jax.block_until_ready(
        classical_layer_forward(x3, w3, single_pass=False, tk_default=256))
    ref3 = np.asarray(x3, np.float64) @ np.asarray(w3, np.float64).T
    assert out3.shape == (B3, N3)
    assert _rel_err(out3, ref3) < 2e-2, "mismatch vs reference (K-reduction)"

    print("KERNEL_OK")
</pallas_src>

<mosaic_0001>
module attributes {stable_mosaic.version = 11 : i64} {
  func.func @_matmul_kernel_single_pass(%arg0: i32, %arg1: i32, %arg2: memref<8x128xbf16, #tpu.memory_space<vmem>>, %arg3: memref<128x128xbf16, #tpu.memory_space<vmem>>, %arg4: memref<8x128xf32, #tpu.memory_space<vmem>>) attributes {dimension_semantics = [#tpu.dimension_semantics<parallel>, #tpu.dimension_semantics<parallel>], iteration_bounds = array<i64: 1, 1>, scalar_prefetch = 0 : i64, scratch_operands = 0 : i64, tpu.core_type = #tpu.core_type<tc>, window_params = [{transform_indices = @transform_0, window_bounds = array<i64: 8, 128>}, {transform_indices = @transform_1, window_bounds = array<i64: 128, 128>}, {transform_indices = @transform_2, window_bounds = array<i64: 8, 128>}]} {
    %c0 = arith.constant 0 : index
    %c0_0 = arith.constant 0 : index
    %0 = vector.load %arg2[%c0, %c0_0] : memref<8x128xbf16, #tpu.memory_space<vmem>>, vector<8x128xbf16>
    %c0_1 = arith.constant 0 : index
    %c0_2 = arith.constant 0 : index
    %1 = vector.load %arg3[%c0_1, %c0_2] : memref<128x128xbf16, #tpu.memory_space<vmem>>, vector<128x128xbf16>
    %cst = arith.constant dense<0.000000e+00> : vector<8x128xf32>
    %2 = tpu.matmul %0, %1, %cst {dimension_numbers = #tpu.dot_dimension_numbers<[1], [0], [0], [1], [0, 0, 1, 1], [], []>} : vector<8x128xbf16>, vector<128x128xbf16>, vector<8x128xf32> -> vector<8x128xf32>
    %c0_3 = arith.constant 0 : index
    %c0_4 = arith.constant 0 : index
    %3 = vector.load %arg4[%c0_3, %c0_4] : memref<8x128xf32, #tpu.memory_space<vmem>>, vector<8x128xf32>
    tpu.vector_store %arg4[%c0_3, %c0_4], %2 {strides = array<i32>} : memref<8x128xf32, #tpu.memory_space<vmem>>, vector<8x128xf32>,
    return
  }
  func.func @transform_0(%arg0: i32, %arg1: i32) -> (i32, i32) {
    %c0_i32 = arith.constant 0 : i32
    %c0_i32_0 = arith.constant 0 : i32
    return %arg1, %c0_i32 : i32, i32
  }
  func.func @transform_1(%arg0: i32, %arg1: i32) -> (i32, i32) {
    %c0_i32 = arith.constant 0 : i32
    %c0_i32_0 = arith.constant 0 : i32
    return %c0_i32, %arg0 : i32, i32
  }
  func.func @transform_2(%arg0: i32, %arg1: i32) -> (i32, i32) {
    %c0_i32 = arith.constant 0 : i32
    return %arg1, %arg0 : i32, i32
  }
}

</mosaic_0001>

<bundles_post_ra>
// kernel: tpu_custom_call.1
= control target key start
LH: loop header
LB: loop body
LE: loop exit
PB: predicated region body
PF: predicated region fallthrough
CT: control target
= control target key end

     0   :  { %7 = vsyncpa [#allocation3], 0  ;;  %s291_s0 = inlined_call_operand.hbm [shape: bf16[8,128], index: 0, kind: input, shape index: {}]   ;;  %s292_s1 = inlined_call_operand.hbm [shape: bf16[128,128], index: 1, kind: input, shape index: {}]   ;;  %s293_s2 = inlined_call_operand.hbm [shape: f32[8,128], index: 2, kind: output, shape index: {}]  }
   0x1   :  { %8 = vsyncpa [#allocation6], 0 }
   0x2   :  { %9 = vsyncpa [#allocation4], 0  ;;  %s15_s11 = sshll.u32 %s291_s0, 4  ;;  %s262_s12 = smov [#allocation2]   ;;  %s16_s11 = int_to_ptr.hbm [resolvable:$true] %s15_s11 }
   0x3   :  { %s17_s13 = sshll.u32 %s262_s12, 4  ;;  %s25_s16 = sshll.u32 %s292_s1, 4  ;;  %s18_s13 = int_to_ptr.vmem [resolvable:$true] %s17_s13  ;;  %s26_s16 = int_to_ptr.hbm [resolvable:$true] %s25_s16 }
   0x4   :  { %20 = dma.hbm_to_vmem [thread:$0]  %s16_s11, 64, %s18_s13, [#allocation3]  }
   0x5   :  { %s263_s17 = smov [#allocation5]   ;;  %s264_s19 = smov 64  }
   0x6   :  { %s27_s18 = sshll.u32 %s263_s17, 4  ;;  %s265_s20 = smov 4   ;;  %s28_s18 = int_to_ptr.vmem [resolvable:$true] %s27_s18 }
   0x7   :  { %33 = dma.hbm_to_vmem [thread:$0]  %s26_s16, 1024, %s28_s18, [#allocation6], %s264_s19, %s264_s19, %s265_s20  }
   0x8   :  { %256 = dma.done.wait [#allocation3], 64  }
   0x9   :  { %257 = vsyncadd [#allocation3], 4294967232 }
   0xa   :  { %258 = dma.done.wait [#allocation6], 1024  }
   0xb   :  { %259 = vsyncadd [#allocation6], 4294966272  ;;  %v178_v0 = vld [vmem:[#allocation5 + $0x38] sm:$0xff]  ;;  %v177_v1 = vld [vmem:[#allocation5 + $0x30] sm:$0xff]  ;;  %s266_s0 = smov [#allocation7]   ;;  %s128_s23 = sshll.u32 %s293_s2, 4  ;;  %s129_s23 = int_to_ptr.hbm [resolvable:$true] %s128_s23 }
   0xc   :  { %107 = vmatpush.bf16.msra.mxu0 %v178_v0  ;;  %v176_v2 = vld [vmem:[#allocation5 + $0x28] sm:$0xff]  ;;  %v175_v3 = vld [vmem:[#allocation5 + $0x20] sm:$0xff]  ;;  %v174_v4 = vld [vmem:[#allocation5 + $0x18] sm:$0xff]  ;;  %s126_s1 = sshll.u32 %s266_s0, 4  ;;  %s127_s1 = int_to_ptr.vmem [resolvable:$true] %s126_s1 }
   0xd   :  { %v173_v5 = vld [vmem:[#allocation5 + $0x10] sm:$0xff]  ;;  %v172_v6 = vld [vmem:[#allocation5 + $0x8] sm:$0xff]  ;;  %v171_v7 = vld [vmem:[#allocation5] sm:$0xff] }
   0xe   :  { %v42_v8 = vld [vmem:[#allocation2] sm:$0xf] }
  0x10   :  { %108 = vmatpush.bf16.msra.mxu0 %v177_v1 }
  0x14   :  { %109 = vmatpush.bf16.msra.mxu0 %v176_v2 }
  0x18   :  { %110 = vmatpush.bf16.msra.mxu0 %v175_v3 }
  0x1c   :  { %111 = vmatpush.bf16.msra.mxu0 %v174_v4 }
  0x20   :  { %112 = vmatpush.bf16.msra.mxu0 %v173_v5 }
  0x24   :  { %113 = vmatpush.bf16.msra.mxu0 %v172_v6 }
  0x28   :  { %114 = vmatpush.bf16.msra.mxu0 %v171_v7 }
  0x2b   :  { %115 = vmatmul.bf16.vlgmr.msra.gmra.mxu0 %v42_v8 }
  0xa8   :  { %v116_v9 = vpop.f32.mrf.mxu0 }
  0xa9   :  { %120 = vst [vmem:[#allocation7] sm:$0xff] %v116_v9 }
  0xaa   :  { %131 = dma.vmem_to_hbm [thread:$0]  %s127_s1, 128, %s129_s23, [#allocation4]  }
  0xb0   :  { %v118_v10 = vpop.f32.mrf.mxu0 }
  0xb1   :  { %260 = dma.done.wait [#allocation4], 128  }
  0xb2   :  { %261 = vsyncadd [#allocation4], 4294967168 }
  0xb3   :  { %136 = vsyncpa [#allocation3], 1 }
  0xb4   :  { %137 = vsyncpa [#allocation6], 1 }
  0xb5   :  { %138 = vsyncpa [#allocation4], 1 }

</bundles_post_ra>
